<compile_context>
chip_gen: v5e
topology: v5e:2x2
jax: 0.10.0
libtpu: 0.0.40
codegen_flags: <defaults>
</compile_context>

<pallas_src>
import math
from types import SimpleNamespace

import jax
import jax.numpy as jnp
import numpy as np
from jax.experimental import pallas as pl
from jax.experimental.pallas import tpu as pltpu


def _linear_kernel(x_ref, w_ref, b_ref, o_ref):
    # Single-step kernel: x (M, E), w (E, H), b (1, H) fully resident in VMEM.
    y = jnp.dot(x_ref[...], w_ref[...], preferred_element_type=jnp.float32)
    o_ref[...] = (y + b_ref[...]).astype(o_ref.dtype)


def linear_forward(x, w, b):
    """y = x @ w + b applied over the last axis of x.

    x : (..., E)
    w : (E, H)   -- PyTorch `description_fc.weight` transposed
    b : (1, H)   -- PyTorch `description_fc.bias` as a row vector
    """
    *lead, e = x.shape
    h = w.shape[1]
    x2 = x.reshape(-1, e)          # collapse batch/seq -> one MXU matmul
    m = x2.shape[0]

    out = pl.pallas_call(
        _linear_kernel,
        out_shape=jax.ShapeDtypeStruct((m, h), x.dtype),
        grid=(1,),
        in_specs=[
            pl.BlockSpec((m, e), lambda i: (0, 0)),
            pl.BlockSpec((e, h), lambda i: (0, 0)),
            pl.BlockSpec((1, h), lambda i: (0, 0)),
        ],
        out_specs=pl.BlockSpec((m, h), lambda i: (0, 0)),
        compiler_params=pltpu.CompilerParams(
            dimension_semantics=("arbitrary",)),
    )(x2, w, b)
    return out.reshape(*lead, h)


def source_node_forward(node_input, w, b):
    # Mirrors SourceNode.forward: apply the Linear to `x.description`.
    return linear_forward(node_input.description, w, b)


def source_node_reference(node_input, w, b):
    """Pure-JAX reference mirroring the PyTorch forward."""
    return node_input.description @ w + b[0]


if __name__ == "__main__":
    # Small shapes consistent with the module: batch=2, seq=8, embedding=32 -> hidden=32.
    B, N, EMBEDDING_DIM, HIDDEN_DIM = 2, 8, 32, 32

    key = jax.random.PRNGKey(0)
    kx, kw, kb = jax.random.split(key, 3)

    desc = jax.random.normal(kx, (B, N, EMBEDDING_DIM), dtype=jnp.float32)
    node_input = SimpleNamespace(description=desc)   # stands in for x.description

    # PyTorch nn.Linear default init: uniform(-1/sqrt(fan_in), 1/sqrt(fan_in)).
    bound = 1.0 / math.sqrt(EMBEDDING_DIM)
    w = jax.random.uniform(kw, (EMBEDDING_DIM, HIDDEN_DIM), jnp.float32,
                           -bound, bound)
    b = jax.random.uniform(kb, (1, HIDDEN_DIM), jnp.float32, -bound, bound)

    y = source_node_forward(node_input, w, b)
    y = jax.block_until_ready(y)

    y_ref = source_node_reference(node_input, w, b)
    np.testing.assert_allclose(np.asarray(y), np.asarray(y_ref),
                               rtol=1e-5, atol=1e-5)

    print("KERNEL_OK")
</pallas_src>

<mosaic_0001>
module attributes {stable_mosaic.version = 11 : i64} {
  func.func @_linear_kernel(%arg0: i32, %arg1: memref<16x32xf32, #tpu.memory_space<vmem>>, %arg2: memref<32x32xf32, #tpu.memory_space<vmem>>, %arg3: memref<1x32xf32, #tpu.memory_space<vmem>>, %arg4: memref<16x32xf32, #tpu.memory_space<vmem>>) attributes {dimension_semantics = [#tpu.dimension_semantics<arbitrary>], iteration_bounds = array<i64: 1>, scalar_prefetch = 0 : i64, scratch_operands = 0 : i64, tpu.core_type = #tpu.core_type<tc>, window_params = [{pipeline_mode = #tpu.pipeline_mode<synchronous>, transform_indices = @transform_0, window_bounds = array<i64: 16, 32>}, {pipeline_mode = #tpu.pipeline_mode<synchronous>, transform_indices = @transform_1, window_bounds = array<i64: 32, 32>}, {pipeline_mode = #tpu.pipeline_mode<synchronous>, transform_indices = @transform_2, window_bounds = array<i64: 1, 32>}, {pipeline_mode = #tpu.pipeline_mode<synchronous>, transform_indices = @transform_3, window_bounds = array<i64: 16, 32>}]} {
    %c0 = arith.constant 0 : index
    %c0_0 = arith.constant 0 : index
    %0 = vector.load %arg1[%c0, %c0_0] : memref<16x32xf32, #tpu.memory_space<vmem>>, vector<16x32xf32>
    %c0_1 = arith.constant 0 : index
    %c0_2 = arith.constant 0 : index
    %1 = vector.load %arg2[%c0_1, %c0_2] : memref<32x32xf32, #tpu.memory_space<vmem>>, vector<32x32xf32>
    %cst = arith.constant dense<0.000000e+00> : vector<16x32xf32>
    %2 = tpu.matmul %0, %1, %cst {dimension_numbers = #tpu.dot_dimension_numbers<[1], [0], [0], [1], [0, 0, 1, 1], [], []>} : vector<16x32xf32>, vector<32x32xf32>, vector<16x32xf32> -> vector<16x32xf32>
    %c0_3 = arith.constant 0 : index
    %c0_4 = arith.constant 0 : index
    %3 = vector.load %arg3[%c0_3, %c0_4] : memref<1x32xf32, #tpu.memory_space<vmem>>, vector<1x32xf32>
    %4 = vector.broadcast %3 : vector<1x32xf32> to vector<16x32xf32>
    %5 = arith.addf %2, %4 : vector<16x32xf32>
    %c0_5 = arith.constant 0 : index
    %c0_6 = arith.constant 0 : index
    %6 = vector.load %arg4[%c0_5, %c0_6] : memref<16x32xf32, #tpu.memory_space<vmem>>, vector<16x32xf32>
    tpu.vector_store %arg4[%c0_5, %c0_6], %5 {strides = array<i32>} : memref<16x32xf32, #tpu.memory_space<vmem>>, vector<16x32xf32>,
    return
  }
  func.func @transform_0(%arg0: i32) -> (i32, i32) {
    %c0_i32 = arith.constant 0 : i32
    %c0_i32_0 = arith.constant 0 : i32
    %c0_i32_1 = arith.constant 0 : i32
    return %c0_i32, %c0_i32_0 : i32, i32
  }
  func.func @transform_1(%arg0: i32) -> (i32, i32) {
    %c0_i32 = arith.constant 0 : i32
    %c0_i32_0 = arith.constant 0 : i32
    %c0_i32_1 = arith.constant 0 : i32
    return %c0_i32, %c0_i32_0 : i32, i32
  }
  func.func @transform_2(%arg0: i32) -> (i32, i32) {
    %c0_i32 = arith.constant 0 : i32
    %c0_i32_0 = arith.constant 0 : i32
    %c0_i32_1 = arith.constant 0 : i32
    return %c0_i32, %c0_i32_0 : i32, i32
  }
  func.func @transform_3(%arg0: i32) -> (i32, i32) {
    %c0_i32 = arith.constant 0 : i32
    %c0_i32_0 = arith.constant 0 : i32
    %c0_i32_1 = arith.constant 0 : i32
    return %c0_i32, %c0_i32_0 : i32, i32
  }
}

</mosaic_0001>

<bundles_post_ra>
// kernel: tpu_custom_call.1
= control target key start
LH: loop header
LB: loop body
LE: loop exit
PB: predicated region body
PF: predicated region fallthrough
CT: control target
= control target key end

     0   :  { %8 = vsyncpa [#allocation3], 0  ;;  %s249_s0 = inlined_call_operand.hbm [shape: f32[16,32], index: 0, kind: input, shape index: {}]   ;;  %s250_s1 = inlined_call_operand.hbm [shape: f32[32,32], index: 1, kind: input, shape index: {}]   ;;  %s251_s2 = inlined_call_operand.vmem [shape: f32[1,32], index: 2, kind: input, shape index: {}]   ;;  %s252_s3 = inlined_call_operand.hbm [shape: f32[16,32], index: 3, kind: output, shape index: {}]  }
   0x1   :  { %9 = vsyncpa [#allocation6], 0 }
   0x2   :  { %10 = vsyncpa [#allocation4], 0  ;;  %s15_s14 = sshll.u32 %s249_s0, 4  ;;  %s199_s15 = smov [#allocation2]   ;;  %s16_s14 = int_to_ptr.hbm [resolvable:$true] %s15_s14 }
   0x3   :  { %s17_s16 = sshll.u32 %s199_s15, 4  ;;  %s28_s19 = sshll.u32 %s250_s1, 4  ;;  %s18_s16 = int_to_ptr.vmem [resolvable:$true] %s17_s16  ;;  %s29_s19 = int_to_ptr.hbm [resolvable:$true] %s28_s19 }
   0x4   :  { %s200_s20 = smov 128   ;;  %s201_s21 = smov 8  }
   0x5   :  { %23 = dma.hbm_to_vmem [thread:$0]  %s16_s14, 256, %s18_s16, [#allocation3], %s200_s20, %s200_s20, %s201_s21  }
   0x6   :  { %s202_s22 = smov [#allocation5]  }
   0x7   :  { %s30_s23 = sshll.u32 %s202_s22, 4  ;;  %s31_s23 = int_to_ptr.vmem [resolvable:$true] %s30_s23 }
   0x8   :  { %36 = dma.hbm_to_vmem [thread:$0]  %s29_s19, 512, %s31_s23, [#allocation6], %s200_s20, %s200_s20, %s201_s21  }
   0x9   :  { %193 = dma.done.wait [#allocation3], 256  }
   0xa   :  { %194 = vsyncadd [#allocation3], 4294967040 }
   0xb   :  { %195 = dma.done.wait [#allocation6], 512  }
   0xc   :  { %196 = vsyncadd [#allocation6], 4294966784  ;;  %v52_v0 = vld [vmem:[#allocation5 + $0x18] sm:$0xff]  ;;  %v51_v1 = vld [vmem:[#allocation5 + $0x10] sm:$0xff]  ;;  %vm57_vm0 = vcmask 261120   ;;  %s203_s24 = smov [#allocation7]  }
   0xd   :  { %76 = vmatpush.msra.mxu0 %v52_v0  ;;  %111 = vmatpush.msra.mxu1 %v52_v0  ;;  %v50_v2 = vld [vmem:[#allocation5 + $0x8] sm:$0xff]  ;;  %v49_v3 = vld [vmem:[#allocation5] sm:$0xff]  ;;  %v47_v4 = vld [vmem:[#allocation2] sm:$0xff]  ;;  %s93_s25 = sshll.u32 %s203_s24, 4  ;;  %s95_s28 = sshll.u32 %s252_s3, 4  ;;  %s94_s25 = int_to_ptr.vmem [resolvable:$true] %s93_s25  ;;  %s96_s28 = int_to_ptr.hbm [resolvable:$true] %s95_s28 }
   0xe   :  { %v48_v5 = vld [vmem:[#allocation2 + $0x8] sm:$0xff]  ;;  %v120_v6 = vld [vmem:[%s251_s2] ss:$0 sm:$0xff] }
   0xf   :  { %77 = vmatpush.msra.mxu0 %v51_v1  ;;  %112 = vmatpush.msra.mxu1 %v51_v1 }
  0x11   :  { %78 = vmatpush.msra.mxu0 %v50_v2  ;;  %113 = vmatpush.msra.mxu1 %v50_v2 }
  0x13   :  { %79 = vmatpush.msra.mxu0 %v49_v3  ;;  %114 = vmatpush.msra.mxu1 %v49_v3 }
  0x14   :  { %109 = vmatmul.msk.f32.vlgmr.msra.gmra.mxu0 %vm57_vm0, %v47_v4  ;;  %110 = vmatmul.msk.f32.vlgmr.msra.gmra.mxu1 %vm57_vm0, %v48_v5 }
  0x91   :  { %v81_v7 = vpop.f32.mrf.mxu0  ;;  %v84_v8 = vpop.f32.mrf.mxu1 }
  0x92   :  { %v82_v9 = vadd.f32 %v120_v6, %v81_v7  ;;  %v85_v10 = vadd.f32 %v120_v6, %v84_v8 }
  0x94   :  { %87 = vst.msk [vmem:[#allocation7] sm:$0xff] %vm57_vm0, %v82_v9 }
  0x95   :  { %88 = vst.msk [vmem:[#allocation7 + $0x8] sm:$0xff] %vm57_vm0, %v85_v10 }
  0x96   :  { %101 = dma.vmem_to_hbm [thread:$0]  %s94_s25, 256, %s96_s28, [#allocation4], %s200_s20, %s200_s20, %s201_s21  }
  0x97   :  { %197 = dma.done.wait [#allocation4], 256  }
  0x98   :  { %198 = vsyncadd [#allocation4], 4294967040 }
  0x99   :  { %106 = vsyncpa [#allocation3], 1 }
  0x9a   :  { %107 = vsyncpa [#allocation6], 1 }
  0x9b   :  { %108 = vsyncpa [#allocation4], 1 }

</bundles_post_ra>
